<compile_context>
chip_gen: v7x
topology: tpu7x:2x2x1
jax: 0.10.0
libtpu: 0.0.40
codegen_flags: <defaults>
</compile_context>

<pallas_src>
import functools

import jax
import jax.numpy as jnp
from jax.experimental import pallas as pl
from jax.experimental.pallas import tpu as pltpu

NEG_SLOPE = 0.2
MASK_VAL = -1e30


# ----------------------------------------------------------------------------
# Chip-derived configuration
# ----------------------------------------------------------------------------
def _round_up(x, m):
    return ((x + m - 1) // m) * m


@functools.lru_cache(maxsize=None)
def _device_kind():
    try:
        return jax.devices()[0].device_kind.lower()
    except Exception:
        return ""


@functools.lru_cache(maxsize=None)
def _exp_dtype():
    # bf16 exp on v6e/v7x (bf16 EUP ~2x transcendental throughput, and the
    # separate p.astype(bf16) cast disappears). v5e and older: f32 exp.
    kind = _device_kind()
    if not kind or any(t in kind for t in ("v2", "v3", "v4", "v5")):
        return jnp.float32
    return jnp.bfloat16


@functools.lru_cache(maxsize=None)
def _vmem_limit_bytes():
    # ~3/4 of physical VMEM (v5e/v6e: 96 MiB, v7x: 48 MiB) instead of a
    # hard-coded 32 MiB; leaves headroom for Mosaic scratch + double buffers.
    try:
        cap = pltpu.get_tpu_info().vmem_capacity_bytes
        return int(min(cap * 3 // 4, 100 * 1024 * 1024))
    except Exception:
        return 64 * 1024 * 1024


@functools.lru_cache(maxsize=None)
def _tile_cap():
    # v7x has half the VMEM of v5e/v6e -> smaller default row block.
    return 128 if "v7" in _device_kind() else 256


def _compiler_params():
    return pltpu.CompilerParams(dimension_semantics=("parallel",),
                                vmem_limit_bytes=_vmem_limit_bytes())


def _choose_tile_m(n):
    return min(_tile_cap(), _round_up(n, 32))


# ----------------------------------------------------------------------------
# Shared in-kernel helpers
# ----------------------------------------------------------------------------
def _log_softmax(z):
    m = jnp.max(z, axis=-1, keepdims=True)
    zz = z - m
    return zz - jnp.log(jnp.sum(jnp.exp(zz), axis=-1, keepdims=True))


def _masked_softmax_aggregate(mask, ar, al_t, xw_aug, heads, aug_ch,
                              approx_recip=True):
    """Masked per-head softmax over source nodes + aggregation.

    mask   : [TM, N] bool      adjacency rows of this target block
    ar     : [TM, H] f32       alpha_r for the block's target rows
    al_t   : [H, N]  f32       alpha_l for all source rows (lane-major)
    xw_aug : [N, H*(C+1)] bf16 transformed sources; per-head last column == 1
                               so p @ xw_aug yields the aggregation AND the
                               softmax denominator in one MXU matmul
                               (no per-head XLU cross-lane sum).
    returns [TM, H*C] f32 (pre-bias).
    """
    out_ch = aug_ch - 1
    exp_dt = _exp_dtype()
    outs = []
    for h in range(heads):
        e = ar[:, h:h + 1] + al_t[h:h + 1, :]                   # [TM, N]
        e = jnp.maximum(e, NEG_SLOPE * e)                       # LeakyReLU
        e = jnp.where(mask, e, MASK_VAL)                        # single mask (f32)
        m = jnp.max(e, axis=-1, keepdims=True)                  # finite (self loop)
        # masked entries: exp(-1e30) underflows to exactly 0 (also in bf16).
        p = jnp.exp((e - m).astype(exp_dt)).astype(jnp.bfloat16)
        acc = jnp.dot(p, xw_aug[:, h * aug_ch:(h + 1) * aug_ch],
                      preferred_element_type=jnp.float32)       # [TM, C+1]
        num, denom = acc[:, :out_ch], acc[:, out_ch:out_ch + 1]
        if approx_recip:
            outs.append(num * pl.reciprocal(denom, approx=True))
        else:
            outs.append(num / denom)          # exact divide on narrow [TM,C]
    return outs[0] if heads == 1 else jnp.concatenate(outs, axis=-1)


# ----------------------------------------------------------------------------
# Pallas kernels
# ----------------------------------------------------------------------------
def precompute_kernel(x_ref, w_ref, ones_ref, attlr_ref, xw_ref, alr_ref):
    """xw_aug = x @ W1_aug + ones_row (bf16 out); [alpha_l | alpha_r] slab."""
    xw = jnp.dot(x_ref[...], w_ref[...],
                 preferred_element_type=jnp.float32) + ones_ref[...]
    xw_ref[...] = xw.astype(jnp.bfloat16)
    # alphas from the f32 xw (zero rows in attlr kill the ones columns).
    alr_ref[...] = jnp.dot(xw, attlr_ref[...],
                           preferred_element_type=jnp.float32)


def conv1_kernel(ar_ref, alt_ref, xw_ref, adj_ref, b1_ref,
                 w2_ref, attl2_ref, attr2_ref, wfr_ref, bfr_ref,
                 c2_ref, fr_ref):
    """GATConv1 (heads=8, concat) + ReLU, fused conv2 precompute + fakereal.

    h is never written to HBM: everything downstream that needs it
    (xw2 / alpha2 for conv2, fakereal Linear + log_softmax) is computed here.
    """
    heads = alt_ref.shape[0]
    aug_ch = xw_ref.shape[1] // heads

    mask = adj_ref[...] != 0                                     # hoisted once
    agg = _masked_softmax_aggregate(mask, ar_ref[...], alt_ref[...],
                                    xw_ref[...], heads, aug_ch)
    h = jnp.maximum(agg + b1_ref[...], 0.0)                      # ReLU (eval)

    # Fused conv2 precompute (tiny; hides under the [TM,N] aggregation).
    xw2 = jnp.dot(h, w2_ref[...], preferred_element_type=jnp.float32)
    al2 = jnp.sum(xw2 * attl2_ref[...], axis=-1, keepdims=True)
    ar2 = jnp.sum(xw2 * attr2_ref[...], axis=-1, keepdims=True)
    ones = jnp.ones((h.shape[0], 1), jnp.float32)
    # one lane-denser slab: [xw2 | 1 | al2 | ar2]
    c2_ref[...] = jnp.concatenate([xw2, ones, al2, ar2], axis=-1)

    # Fused fakereal Linear + its log_softmax: [fr | log_softmax(fr)]
    fr = jnp.dot(h, wfr_ref[...], preferred_element_type=jnp.float32) + bfr_ref[...]
    fr_ref[...] = jnp.concatenate([fr, _log_softmax(fr)], axis=-1)


def conv2_kernel(ar2_ref, al2t_ref, xw2aug_ref, adj_ref, b2_ref, out_ref):
    """GATConv2 (heads=1, concat=False) + log_softmax, one slab store."""
    nclass = xw2aug_ref.shape[1] - 1
    mask = adj_ref[...] != 0
    logits = _masked_softmax_aggregate(mask, ar2_ref[...], al2t_ref[...],
                                       xw2aug_ref[...], 1, nclass + 1,
                                       approx_recip=False)
    logits = logits + b2_ref[...]          # mean over 1 head == identity
    out_ref[...] = jnp.concatenate([logits, _log_softmax(logits)], axis=-1)


# ----------------------------------------------------------------------------
# Wrappers
# ----------------------------------------------------------------------------
def gat_precompute(x, w1_aug, ones_row, attlr_mat, *, tile_m):
    n, fin = x.shape
    hc_aug = w1_aug.shape[1]
    two_h = attlr_mat.shape[1]

    def row(width):
        return pl.BlockSpec((tile_m, width), lambda i: (i, 0))

    def full(shape):
        return pl.BlockSpec(shape, lambda i: (0, 0))

    return pl.pallas_call(
        precompute_kernel,
        out_shape=(jax.ShapeDtypeStruct((n, hc_aug), jnp.bfloat16),   # xw1_aug
                   jax.ShapeDtypeStruct((n, two_h), jnp.float32)),    # [al | ar]
        grid=(n // tile_m,),
        in_specs=[row(fin), full((fin, hc_aug)), full((1, hc_aug)),
                  full((hc_aug, two_h))],
        out_specs=(row(hc_aug), row(two_h)),
        compiler_params=_compiler_params(),
    )(x, w1_aug, ones_row, attlr_mat)


def gat_conv1(ar1, al1_t, xw1_aug, adj, b1, w2, attl2, attr2, wfr, bfr, *, tile_m):
    n = ar1.shape[0]
    heads = al1_t.shape[0]
    hc_aug = xw1_aug.shape[1]
    nhid = b1.shape[1]
    nclass = w2.shape[1]

    def row(width):
        return pl.BlockSpec((tile_m, width), lambda i: (i, 0))

    def full(shape):
        return pl.BlockSpec(shape, lambda i: (0, 0))

    return pl.pallas_call(
        conv1_kernel,
        out_shape=(jax.ShapeDtypeStruct((n, nclass + 3), jnp.float32),  # [xw2|1|al2|ar2]
                   jax.ShapeDtypeStruct((n, 4), jnp.float32)),          # [fr|lsm_fr]
        grid=(n // tile_m,),
        in_specs=[row(heads),            # alpha_r1  [N, H]      row-tiled
                  full((heads, n)),      # alpha_l1^T [H, N]     whole (sources)
                  full((n, hc_aug)),     # xw1_aug bf16 [N,H*(C+1)] whole
                  row(n),                # adj int8  [N, N]      row-tiled
                  full((1, nhid)),       # bias1
                  full((nhid, nclass)),  # W2
                  full((1, nclass)),     # att_l2
                  full((1, nclass)),     # att_r2
                  full((nhid, 2)),       # W_fakereal
                  full((1, 2))],         # b_fakereal
        out_specs=(row(nclass + 3), row(4)),
        compiler_params=_compiler_params(),
    )(ar1, al1_t, xw1_aug, adj, b1, w2, attl2, attr2, wfr, bfr)


def gat_conv2(ar2, al2_t, xw2_aug, adj, b2, *, tile_m):
    n = ar2.shape[0]
    nclass_aug = xw2_aug.shape[1]
    nclass = nclass_aug - 1

    def row(width):
        return pl.BlockSpec((tile_m, width), lambda i: (i, 0))

    def full(shape):
        return pl.BlockSpec(shape, lambda i: (0, 0))

    return pl.pallas_call(
        conv2_kernel,
        out_shape=jax.ShapeDtypeStruct((n, 2 * nclass), jnp.float32),  # [logits|lsm]
        grid=(n // tile_m,),
        in_specs=[row(1),                  # alpha_r2 [N, 1]     row-tiled
                  full((1, n)),            # alpha_l2^T [1, N]   whole
                  full((n, nclass_aug)),   # [xw2 | 1] bf16      whole
                  row(n),                  # adj int8 [N, N]     row-tiled
                  full((1, nclass))],      # bias2
        out_specs=row(2 * nclass),
        compiler_params=_compiler_params(),
    )(ar2, al2_t, xw2_aug, adj, b2)


# ----------------------------------------------------------------------------
# Plain-JAX glue
# ----------------------------------------------------------------------------
def _augment_w1(w1, heads, out_ch):
    """W1 [nembed, H*C] -> W1_aug [nembed, H*(C+1)] (zero col per head) and the
    matching ones-row [1, H*(C+1)] (1 at each head's appended column)."""
    nembed = w1.shape[0]
    w = w1.reshape(nembed, heads, out_ch)
    w_aug = jnp.concatenate([w, jnp.zeros((nembed, heads, 1), w1.dtype)], axis=-1)
    w_aug = w_aug.reshape(nembed, heads * (out_ch + 1))
    ones_row = jnp.zeros((1, heads, out_ch + 1), w1.dtype)
    ones_row = ones_row.at[:, :, out_ch].set(1.0).reshape(1, heads * (out_ch + 1))
    return w_aug, ones_row


def block_diag_att_aug(att):
    """att [H, C] -> [H*(C+1), H] block-diagonal, zero row at the ones slot."""
    H, C = att.shape
    att_aug = jnp.concatenate([att, jnp.zeros((H, 1), att.dtype)], axis=-1)
    eye = jnp.eye(H, dtype=att.dtype)
    return (eye[:, None, :] * att_aug[:, :, None]).reshape(H * (C + 1), H)


def build_adj(edge_index, n, n_pad=None):
    """Dense int8 adjacency (target rows, source cols) with self loops."""
    n_pad = n if n_pad is None else n_pad
    src, dst = edge_index[0], edge_index[1]
    adj = jnp.zeros((n_pad, n_pad), jnp.int8).at[dst, src].set(1)
    idx = jnp.arange(n_pad)
    adj = adj.at[idx, idx].set(1)   # remove_self_loops + add_self_loops
    return adj


def glorot(key, shape, fan_in, fan_out):
    lim = (6.0 / (fan_in + fan_out)) ** 0.5
    return jax.random.uniform(key, shape, jnp.float32, -lim, lim)


def init_params(key, nembed, nhid, nclass):
    num_head = 8
    head_dim = nhid // num_head
    ks = jax.random.split(key, 8)
    p = {}
    # conv1: GATConv(nembed, head_dim, heads=8, concat=True)
    p["w1"] = glorot(ks[0], (nembed, num_head * head_dim), nembed,
                     num_head * head_dim)
    p["att_l1"] = glorot(ks[1], (num_head, head_dim), num_head, head_dim)
    p["att_r1"] = glorot(ks[2], (num_head, head_dim), num_head, head_dim)
    p["b1"] = jnp.zeros((1, num_head * head_dim), jnp.float32)
    # conv2: GATConv(nhid, nclass, heads=1, concat=False)
    p["w2"] = glorot(ks[3], (nhid, nclass), nhid, nclass)
    p["att_l2"] = glorot(ks[4], (1, nclass), 1, nclass)
    p["att_r2"] = glorot(ks[5], (1, nclass), 1, nclass)
    p["b2"] = jnp.zeros((1, nclass), jnp.float32)
    # fakereal: Linear(nhid, 2), weight ~ N(0, 0.05)
    p["wfr"] = 0.05 * jax.random.normal(ks[6], (nhid, 2), jnp.float32)
    bound = 1.0 / (nhid ** 0.5)
    p["bfr"] = jax.random.uniform(ks[7], (1, 2), jnp.float32, -bound, bound)
    p["num_head"] = num_head
    p["head_dim"] = head_dim
    p["nclass"] = nclass
    return p


def stand_gat_forward(x, edge_index, p, tile_m=None):
    n = x.shape[0]
    heads, head_dim, nclass = p["num_head"], p["head_dim"], p["nclass"]
    if tile_m is None:
        tile_m = _choose_tile_m(n)
    tile_m = max(32, _round_up(tile_m, 32))
    n_pad = _round_up(n, tile_m)
    x_p = jnp.pad(x, ((0, n_pad - n), (0, 0))) if n_pad != n else x
    adj = build_adj(edge_index, n, n_pad)                 # int8 [Npad, Npad]

    # Augmented conv1 weights: per-head ones column for the MXU-denominator.
    w1_aug, ones_row = _augment_w1(p["w1"], heads, head_dim)
    attlr = jnp.concatenate([block_diag_att_aug(p["att_l1"]),
                             block_diag_att_aug(p["att_r1"])], axis=1)

    # conv1 precompute (xw1_aug bf16, [alpha_l1 | alpha_r1])
    xw1_aug, alr1 = gat_precompute(x_p, w1_aug, ones_row, attlr, tile_m=tile_m)
    al1_t = alr1[:, :heads].T           # tiny [Npad,H] -> [H,Npad] plumbing
    ar1 = alr1[:, heads:]

    # conv1 + ReLU (dropout = identity in eval mode), fused conv2 precompute
    # and fused fakereal head (h never touches HBM).
    c2slab, frslab = gat_conv1(ar1, al1_t, xw1_aug, adj, p["b1"], p["w2"],
                               p["att_l2"], p["att_r2"], p["wfr"], p["bfr"],
                               tile_m=tile_m)
    xw2_aug = c2slab[:, :nclass + 1].astype(jnp.bfloat16)   # [Npad, nclass+1]
    al2_t = c2slab[:, nclass + 1:nclass + 2].T               # [1, Npad]
    ar2 = c2slab[:, nclass + 2:nclass + 3]                   # [Npad, 1]

    # conv2 (heads=1, concat=False) + log_softmax, single slab output.
    out2 = gat_conv2(ar2, al2_t, xw2_aug, adj, p["b2"], tile_m=tile_m)

    logits = out2[:n, :nclass]
    x_class = out2[:n, nclass:]
    fakeorreal = frslab[:n, :2]
    x_fakereal = frslab[:n, 2:]
    return logits, fakeorreal, x_class, x_fakereal


# ----------------------------------------------------------------------------
# Pure-JAX reference (dense math, same masking convention)
# ----------------------------------------------------------------------------
def _gat_layer_ref(x, w, att_l, att_r, adj, bias, heads, out_ch, apply_relu):
    hp = jax.lax.Precision.HIGHEST
    xw = jnp.dot(x, w, precision=hp)
    xh = xw.reshape(-1, heads, out_ch)
    al = (xh * att_l[None]).sum(-1)                 # [N, H]
    ar = (xh * att_r[None]).sum(-1)                 # [N, H]
    e = ar[:, None, :] + al[None, :, :]             # [N_i, N_j, H]
    e = jnp.where(e >= 0, e, NEG_SLOPE * e)
    mask = (adj != 0)[:, :, None]
    e = jnp.where(mask, e, MASK_VAL)
    m = e.max(axis=1, keepdims=True)
    pexp = jnp.where(mask, jnp.exp(e - m), 0.0)
    attn = pexp / pexp.sum(axis=1, keepdims=True)
    out = jnp.einsum("ijh,jhc->ihc", attn, xh, precision=hp)
    out = out.reshape(-1, heads * out_ch) + bias
    return jnp.maximum(out, 0.0) if apply_relu else out


def stand_gat_forward_ref(x, edge_index, p):
    hp = jax.lax.Precision.HIGHEST
    n = x.shape[0]
    adj = build_adj(edge_index, n)
    h = _gat_layer_ref(x, p["w1"], p["att_l1"], p["att_r1"], adj, p["b1"],
                       p["num_head"], p["head_dim"], True)
    logits = _gat_layer_ref(h, p["w2"], p["att_l2"], p["att_r2"], adj, p["b2"],
                            1, p["nclass"], False)
    fakeorreal = jnp.dot(h, p["wfr"], precision=hp) + p["bfr"]
    x_class = jax.nn.log_softmax(logits, axis=1)
    x_fakereal = jax.nn.log_softmax(fakeorreal, axis=1)
    return logits, fakeorreal, x_class, x_fakereal


# ----------------------------------------------------------------------------
if __name__ == "__main__":
    key = jax.random.PRNGKey(0)
    k_x, k_src, k_dst, k_par = jax.random.split(key, 4)

    N, NEMBED, NHID, NCLASS, E = 64, 32, 32, 4, 192
    TILE_M = 32                       # -> grid=(2,), exercises real tiling

    x = jax.random.normal(k_x, (N, NEMBED), jnp.float32)
    src = jax.random.randint(k_src, (E,), 0, N)
    dst = jax.random.randint(k_dst, (E,), 0, N)
    edge_index = jnp.stack([src, dst], axis=0)          # [2, E]

    params = init_params(k_par, NEMBED, NHID, NCLASS)

    outs = stand_gat_forward(x, edge_index, params, tile_m=TILE_M)
    outs = jax.block_until_ready(outs)

    refs = stand_gat_forward_ref(x, edge_index, params)
    # Tolerance covers bf16 MXU operands (features, attention weights and the
    # MXU-computed denominator), optional bf16 exp, and the approx reciprocal
    # in conv1 (f32 accumulation keeps errors well inside 2e-2 here).
    for o, r in zip(outs, refs):
        assert o.shape == r.shape and o.dtype == r.dtype
        assert jnp.allclose(o, r, rtol=2e-2, atol=2e-2), (
            float(jnp.max(jnp.abs(o - r))))

    print("KERNEL_OK")
</pallas_src>

<mosaic_0001>
module attributes {stable_mosaic.version = 11 : i64} {
  func.func @precompute_kernel(%arg0: i32, %arg1: memref<32x32xf32, #tpu.memory_space<vmem>>, %arg2: memref<32x40xf32, #tpu.memory_space<vmem>>, %arg3: memref<1x40xf32, #tpu.memory_space<vmem>>, %arg4: memref<40x16xf32, #tpu.memory_space<vmem>>, %arg5: memref<32x40xbf16, #tpu.memory_space<vmem>>, %arg6: memref<32x16xf32, #tpu.memory_space<vmem>>) attributes {dimension_semantics = [#tpu.dimension_semantics<parallel>], iteration_bounds = array<i64: 2>, scalar_prefetch = 0 : i64, scratch_operands = 0 : i64, tpu.core_type = #tpu.core_type<tc>, window_params = [{transform_indices = @transform_0, window_bounds = array<i64: 32, 32>}, {pipeline_mode = #tpu.pipeline_mode<synchronous>, transform_indices = @transform_1, window_bounds = array<i64: 32, 40>}, {pipeline_mode = #tpu.pipeline_mode<synchronous>, transform_indices = @transform_2, window_bounds = array<i64: 1, 40>}, {pipeline_mode = #tpu.pipeline_mode<synchronous>, transform_indices = @transform_3, window_bounds = array<i64: 40, 16>}, {transform_indices = @transform_4, window_bounds = array<i64: 32, 40>}, {transform_indices = @transform_5, window_bounds = array<i64: 32, 16>}]} {
    %c0 = arith.constant 0 : index
    %c0_0 = arith.constant 0 : index
    %0 = vector.load %arg1[%c0, %c0_0] : memref<32x32xf32, #tpu.memory_space<vmem>>, vector<32x32xf32>
    %c0_1 = arith.constant 0 : index
    %c0_2 = arith.constant 0 : index
    %1 = vector.load %arg2[%c0_1, %c0_2] : memref<32x40xf32, #tpu.memory_space<vmem>>, vector<32x40xf32>
    %cst = arith.constant dense<0.000000e+00> : vector<32x40xf32>
    %2 = tpu.matmul %0, %1, %cst {dimension_numbers = #tpu.dot_dimension_numbers<[1], [0], [0], [1], [0, 0, 1, 1], [], []>} : vector<32x32xf32>, vector<32x40xf32>, vector<32x40xf32> -> vector<32x40xf32>
    %c0_3 = arith.constant 0 : index
    %c0_4 = arith.constant 0 : index
    %3 = vector.load %arg3[%c0_3, %c0_4] : memref<1x40xf32, #tpu.memory_space<vmem>>, vector<1x40xf32>
    %4 = vector.broadcast %3 : vector<1x40xf32> to vector<32x40xf32>
    %5 = arith.addf %2, %4 : vector<32x40xf32>
    %6 = arith.truncf %5 : vector<32x40xf32> to vector<32x40xbf16>
    %c0_5 = arith.constant 0 : index
    %c0_6 = arith.constant 0 : index
    %7 = vector.load %arg5[%c0_5, %c0_6] : memref<32x40xbf16, #tpu.memory_space<vmem>>, vector<32x40xbf16>
    tpu.vector_store %arg5[%c0_5, %c0_6], %6 {strides = array<i32>} : memref<32x40xbf16, #tpu.memory_space<vmem>>, vector<32x40xbf16>,
    %c0_7 = arith.constant 0 : index
    %c0_8 = arith.constant 0 : index
    %8 = vector.load %arg4[%c0_7, %c0_8] : memref<40x16xf32, #tpu.memory_space<vmem>>, vector<40x16xf32>
    %cst_9 = arith.constant dense<0.000000e+00> : vector<32x16xf32>
    %9 = tpu.matmul %5, %8, %cst_9 {dimension_numbers = #tpu.dot_dimension_numbers<[1], [0], [0], [1], [0, 0, 1, 1], [], []>} : vector<32x40xf32>, vector<40x16xf32>, vector<32x16xf32> -> vector<32x16xf32>
    %c0_10 = arith.constant 0 : index
    %c0_11 = arith.constant 0 : index
    %10 = vector.load %arg6[%c0_10, %c0_11] : memref<32x16xf32, #tpu.memory_space<vmem>>, vector<32x16xf32>
    tpu.vector_store %arg6[%c0_10, %c0_11], %9 {strides = array<i32>} : memref<32x16xf32, #tpu.memory_space<vmem>>, vector<32x16xf32>,
    return
  }
  func.func @transform_0(%arg0: i32) -> (i32, i32) {
    %c0_i32 = arith.constant 0 : i32
    %c0_i32_0 = arith.constant 0 : i32
    return %arg0, %c0_i32 : i32, i32
  }
  func.func @transform_1(%arg0: i32) -> (i32, i32) {
    %c0_i32 = arith.constant 0 : i32
    %c0_i32_0 = arith.constant 0 : i32
    %c0_i32_1 = arith.constant 0 : i32
    return %c0_i32, %c0_i32_0 : i32, i32
  }
  func.func @transform_2(%arg0: i32) -> (i32, i32) {
    %c0_i32 = arith.constant 0 : i32
    %c0_i32_0 = arith.constant 0 : i32
    %c0_i32_1 = arith.constant 0 : i32
    return %c0_i32, %c0_i32_0 : i32, i32
  }
  func.func @transform_3(%arg0: i32) -> (i32, i32) {
    %c0_i32 = arith.constant 0 : i32
    %c0_i32_0 = arith.constant 0 : i32
    %c0_i32_1 = arith.constant 0 : i32
    return %c0_i32, %c0_i32_0 : i32, i32
  }
  func.func @transform_4(%arg0: i32) -> (i32, i32) {
    %c0_i32 = arith.constant 0 : i32
    %c0_i32_0 = arith.constant 0 : i32
    return %arg0, %c0_i32 : i32, i32
  }
  func.func @transform_5(%arg0: i32) -> (i32, i32) {
    %c0_i32 = arith.constant 0 : i32
    %c0_i32_0 = arith.constant 0 : i32
    return %arg0, %c0_i32 : i32, i32
  }
}

</mosaic_0001>

<bundles_post_ra>
// kernel: tpu_custom_call.1
= control target key start
LH: loop header
LB: loop body
LE: loop exit
PB: predicated region body
PF: predicated region fallthrough
CT: control target
= control target key end

     0   :  { %11 = vsyncpa [#allocation3], 0  ;;  %s1493_s0 = inlined_call_operand.hbm [shape: f32[64,32], index: 0, kind: input, shape index: {}]   ;;  %s1494_s1 = inlined_call_operand.hbm [shape: f32[32,40], index: 1, kind: input, shape index: {}]   ;;  %s1495_s2 = inlined_call_operand.hbm [shape: f32[1,40], index: 2, kind: input, shape index: {}]   ;;  %s1496_s3 = inlined_call_operand.hbm [shape: f32[40,16], index: 3, kind: input, shape index: {}]   ;;  %s1497_s4 = inlined_call_operand.hbm [shape: bf16[64,40], index: 4, kind: output, shape index: {0}]   ;;  %s1498_s5 = inlined_call_operand.hbm [shape: f32[64,16], index: 5, kind: output, shape index: {1}]  }
   0x1   :  { %13 = vsyncpa [#allocation3 + $0x1], 0 }
   0x2   :  { %14 = vsyncpa [#allocation6], 0 }
   0x3   :  { %15 = vsyncpa [#allocation9], 0 }
   0x4   :  { %16 = vsyncpa [#allocation4], 0 }
   0x5   :  { %18 = vsyncpa [#allocation4 + $0x1], 0 }
   0x6   :  { %19 = vsyncpa [#allocation12], 0 }
   0x7   :  { %21 = vsyncpa [#allocation12 + $0x1], 0  ;;  %s1169_s18 = smov 0   ;;  %s1171_s19 = smov 0  }
   0x8   :  { %s1173_s20 = smov 0   ;;  %s1175_s21 = smov 0  }
   0x9 LB: > { %s1190_s22 = sadd.s32 4294967295, %s1125_s21   ;;  %s710_s23 = sadd.s32 4294967294, %s1125_s21   ;;  %s1125_s21 = sphi %s1175_s21, %s1521_s21   ;;  %s1121_s20 = sphi %s1173_s20, %s1520_s20   ;;  %s1117_s19 = sphi %s1171_s19, %s1519_s19   ;;  %s1113_s18 = sphi %s1169_s18, %s1518_s18  }
   0xa   : > { %p47_p0 = scmp.ne.s32.totalorder %s1117_s19, %s1113_s18  ;;  %p1499_p1 = scmp.eq.s32.totalorder %s1190_s22, 0 }
   0xb   : > { %p140_p3 = scmp.eq.s32.totalorder %s710_s23, 1  ;;  %p711_p5 = scmp.ge.s32.totalorder %s1125_s21, 1 }
   0xc   : > { %p1199_p4 = por %p1499_p1, %p47_p0  ;;  %p173_p7 = scmp.lt.s32.totalorder %s1125_s21, 3 }
   0xd   : > { %p1204_p6 = por %p140_p3, %p47_p0  ;;  %s1127_s27 = smov [#allocation5]  }
   0xe   : > { %s1502_s24 = scalar_select %p1199_p4, 1, 0 }
   0xf   : > { %s1503_s25 = scalar_select %p1204_p6, 1, 0 }
  0x10   : > { %p1209_p8 = pnand %p711_p5, %p173_p7  ;;  %s185_s28 = sshll.u32 %s1127_s27, 4  ;;  %s1213_s28 = int_to_ptr.vmem [resolvable:$true] %s185_s28 }
  0x11   : > { %s1128_s30 = smov [#allocation7]   ;;  %s1129_s7 = smov [#allocation8]  }
  0x12   : > { %s1504_s26 = scalar_select %p1209_p8, 1, 0 }
  0x13   : > { %p835_p9 = pneg %p1209_p8  ;;  %s199_s6 = sshll.u32 %s1128_s30, 4  ;;  %s1224_s6 = int_to_ptr.vmem [resolvable:$true] %s199_s6 }
  0x14   : > { %s1226_s8 = sshll.u32 %s1129_s7, 4  ;;  %s905_s11 = scalar_lea.hbm %s1494_s1, 512  ;;  %s210_s8 = int_to_ptr.vmem [resolvable:$true] %s1226_s8 }
  0x15   : > { %p1220_p11 = pnand %p835_p9, %p1499_p1  ;;  %p906_p12 = scmp.ne.s32.totalorder %s1494_s1, %s905_s11 }
  0x16   : > { %p912_p5 = scmp.lt.u32.totalorder %s905_s11, %s1494_s1 }
  0x17   : > { %p1236_p13 = pneg %p1220_p11 }
  0x19   : > { %p908_p0 = pnand %p1236_p13, %p906_p12 }
  0x1b   : > { %p909_p3 = pneg %p908_p0 }
  0x1d   : > { %p914_p7 = pnand %p912_p5, %p909_p3 }
  0x1f   : > { %917 = shalt.err (!%p914_p7)
}
  0x20   : > { %s918_s17 = scalar_lea.vmem %s1213_s28, 512  ;;  %p926_p2 = scmp.lt.s32.totalorder %s1213_s28, %s1213_s28 }
  0x21   : > { %p919_p9 = scmp.ne.s32.totalorder %s1213_s28, %s918_s17  ;;  %p927_p6 = scmp.lt.s32.totalorder %s918_s17, %s918_s17 }
  0x23   : > { %p921_p10 = pnand %p919_p9, %p1236_p13  ;;  %p928_p12 = por %p927_p6, %p926_p2 }
  0x25   : > { %p922_p1 = pneg %p921_p10 }
  0x27   : > { %p929_p0 = pnand %p928_p12, %p922_p1 }
  0x29   : > { %932 = shalt.err (!%p929_p0)
}
  0x2a   : > { %s1130_s23 = smov 128   ;;  %s1131_s27 = smov 8  }
  0x2b   : > { %838 = dma.hbm_to_vmem [thread:$0]  (!%p1220_p11), %s1494_s1, 512, %s1213_s28, [#allocation6], %s1130_s23, %s1130_s23, %s1131_s27  }
  0x2c   : > { %s933_s11 = scalar_lea.hbm %s1495_s2, 16 }
  0x2d   : > { %p934_p1 = scmp.ne.s32.totalorder %s1495_s2, %s933_s11  ;;  %p940_p10 = scmp.lt.u32.totalorder %s933_s11, %s1495_s2 }
  0x2f   : > { %p936_p2 = pnand %p934_p1, %p1236_p13 }
  0x31   : > { %p937_p6 = pneg %p936_p2 }
  0x33   : > { %p942_p3 = pnand %p940_p10, %p937_p6 }
  0x35   : > { %945 = shalt.err (!%p942_p3)
}
  0x36   : > { %s946_s28 = scalar_lea.vmem %s1224_s6, 16  ;;  %s953_s17 = scalar_lea.vmem %s1224_s6, 32 }
  0x37   : > { %p947_p5 = scmp.ne.s32.totalorder %s1224_s6, %s946_s28  ;;  %p954_p12 = scmp.lt.s32.totalorder %s1224_s6, %s1224_s6 }
  0x38   : > { %p955_p0 = scmp.lt.s32.totalorder %s953_s17, %s946_s28 }
  0x39   : > { %p949_p7 = pnand %p947_p5, %p1236_p13 }
  0x3a   : > { %p956_p1 = por %p955_p0, %p954_p12 }
  0x3b   : > { %p950_p9 = pneg %p949_p7 }
  0x3d   : > { %p957_p2 = pnand %p956_p1, %p950_p9 }
  0x3f   : > { %960 = shalt.err (!%p957_p2)
}
  0x40   : > { %841 = dma.hbm_to_vmem [thread:$0]  (!%p1220_p11), %s1495_s2, 16, %s1224_s6, [#allocation6]  }
  0x41   : > { %s961_s11 = scalar_lea.hbm %s1496_s3, 640 }
  0x42   : > { %p962_p6 = scmp.ne.s32.totalorder %s1496_s3, %s961_s11  ;;  %p968_p5 = scmp.lt.u32.totalorder %s961_s11, %s1496_s3 }
  0x44   : > { %p964_p10 = pnand %p962_p6, %p1236_p13 }
  0x46   : > { %p965_p3 = pneg %p964_p10 }
  0x48   : > { %p970_p7 = pnand %p968_p5, %p965_p3 }
  0x4a   : > { %973 = shalt.err (!%p970_p7)
}
  0x4b   : > { %s974_s28 = scalar_lea.vmem %s210_s8, 640  ;;  %p982_p1 = scmp.lt.s32.totalorder %s210_s8, %s210_s8 }
  0x4c   : > { %p975_p9 = scmp.ne.s32.totalorder %s210_s8, %s974_s28  ;;  %p983_p2 = scmp.lt.s32.totalorder %s974_s28, %s974_s28 }
  0x4e   : > { %p977_p12 = pnand %p975_p9, %p1236_p13  ;;  %p984_p4 = por %p983_p2, %p982_p1 }
  0x50   : > { %p978_p0 = pneg %p977_p12 }
  0x52   : > { %p985_p8 = pnand %p984_p4, %p978_p0 }
  0x54   : > { %988 = shalt.err (!%p985_p8)
}
  0x55   : > { %844 = dma.hbm_to_vmem [thread:$0]  (!%p1220_p11), %s1496_s3, 640, %s210_s8, [#allocation9], %s1130_s23, %s1130_s23, %s1131_s27  }
  0x56   : > { %s1307_s14 = sadd.s32 1, %s1125_s21   ;;  %s34_s30 = sadd.s32 1, %s1121_s20 }
  0x57   : > { %s31_s29 = ssub.s32 %s1125_s21, %s1307_s14  ;;  %p41_p8 = scmp.ne.s32.totalorder %s1121_s20, %s1117_s19 }
  0x58   : > { %p32_p4 = scmp.eq.s32.totalorder %s31_s29, 0  ;;  %p42_p13 = scmp.eq.s32.totalorder %s1125_s21, 0 }
  0x59   : > { %p859_p6 = scmp.lt.s32.totalorder %s1125_s21, 2  ;;  %p1507_p3 = scmp.eq.s32.totalorder %s1190_s22, 1 }
  0x5a   : > { %s1317_s7 = scalar_select %p32_p4, %s1121_s20, %s34_s30  }
  0x5b   : > { %p43_p10 = por %p42_p13, %p41_p8  ;;  %p1321_p5 = por %p1507_p3, %p41_p8 }
  0x5c   : > { %s223_s10 = sand.u32 1, %s1121_s20   ;;  %s747_s11 = sshll.u32 %s1125_s21, 9 }
  0x5d   : > { %s716_s8 = sshll.u32 %s223_s10, 5  ;;  %s1330_s15 = scalar_lea.hbm %s1493_s0, %s747_s11 }
  0x5e   : > { %s227_s16 = scalar_lea.vmem [#allocation2], %s716_s8  ;;  %p1332_p11 = pnand %p859_p6, %p43_p10 }
  0x5f   : > { %s234_s28 = sshll.u32 %s227_s16, 4  ;;  %s1338_s17 = scalar_lea.sflag [#allocation3], %s223_s10  ;;  %s1336_s28 = int_to_ptr.vmem [resolvable:$true] %s234_s28 }
  0x60   : > { %s989_s29 = scalar_lea.hbm %s1330_s15, 512  ;;  %p991_p9 = pneg %p1332_p11 }
  0x61   : > { %p990_p7 = scmp.ne.s32.totalorder %s1330_s15, %s989_s29  ;;  %s994_s8 = scalar_lea.hbm %s1493_s0, 1024 }
  0x62   : > { %p995_p1 = scmp.lt.u32.totalorder %s1330_s15, %s1493_s0  ;;  %p996_p2 = scmp.lt.u32.totalorder %s994_s8, %s989_s29 }
  0x63   : > { %p992_p12 = pnand %p991_p9, %p990_p7  ;;  %p998_p8 = scmp.lt.u32.totalorder %s989_s29, %s1330_s15 }
  0x64   : > { %p997_p4 = por %p996_p2, %p995_p1 }
  0x65   : > { %p993_p0 = pneg %p992_p12 }
  0x66   : > { %p999_p13 = por %p998_p8, %p997_p4 }
  0x68   : > { %p1000_p6 = pnand %p999_p13, %p993_p0 }
  0x6a   : > { %1003 = shalt.err (!%p1000_p6)
}
  0x6b   : > { %s1004_s10 = scalar_lea.vmem %s1336_s28, 512  ;;  %s1132_s16 = smov [#allocation2]  }
  0x6c   : > { %p1005_p10 = scmp.ne.s32.totalorder %s1336_s28, %s1004_s10  ;;  %s1009_s30 = sshll.u32 %s1132_s16, 4  ;;  %s1010_s30 = int_to_ptr.vmem [resolvable:$false] %s1009_s30 }
  0x6d   : > { %s1011_s11 = scalar_lea.vmem %s1010_s30, 1024  ;;  %p1012_p12 = scmp.lt.s32.totalorder %s1336_s28, %s1010_s30 }
  0x6e   : > { %p1007_p3 = pnand %p1005_p10, %p991_p9  ;;  %p1013_p1 = scmp.lt.s32.totalorder %s1011_s11, %s1004_s10 }
  0x70   : > { %p1008_p7 = pneg %p1007_p3  ;;  %p1014_p2 = por %p1013_p1, %p1012_p12 }
  0x72   : > { %p1015_p4 = pnand %p1014_p2, %p1008_p7 }
  0x74   : > { %1018 = shalt.err (!%p1015_p4)
}
  0x75   : > { %848 = dma.hbm_to_vmem [thread:$0]  (!%p1332_p11), %s1330_s15, 512, %s1336_s28, %s1338_s17, %s1130_s23, %s1130_s23, %s1131_s27  }
  0x76   : > { %p1510_p9 = scmp.ne.s32.totalorder %s1504_s26, 0 }
  0x77   : > { %s1372_s29 = sand.u32 (!%p1510_p9), 1, %s1117_s19   ;;  %p1511_p0 = scmp.ne.s32.totalorder (!%p1510_p9), %s1502_s24, 0 }
  0x78   : > { %246 = sbr.rel (%p1510_p9) target bundleno = 594 (0x252), region = 36  ;;  %s720_s8 = sshll.u32 (!%p1510_p9), %s1372_s29, 5 }
  0x79   : > { %s249_s12 = scalar_lea.sflag (!%p1510_p9), [#allocation3], %s1372_s29  ;;  %s1378_s6 = scalar_lea.vmem (!%p1510_p9), [#allocation2], %s720_s8 }
  0x7f   : > { %1092 = dma.done.wait (%p1511_p0), %s249_s12, 512  }
  0x80   : > { %1094 = vsyncadd (%p1511_p0), %s249_s12, 4294966784  ;;  %p1512_p11 = scmp.eq.s32.totalorder %s1190_s22, 0 }
  0x82   : > { %1096 = dma.done.wait (%p1512_p11), [#allocation6], 528   ;;  %p1513_p8 = pmov %p1512_p11 }
  0x84   : > { %1098 = vsyncadd (%p1513_p8), [#allocation6], 4294966768  ;;  %p1514_p13 = pmov %p1513_p8 }
  0x85   : > { %p1515_p6 = pmov %p1513_p8 }
  0x86   : > { %1100 = dma.done.wait (%p1514_p13), [#allocation9], 640  }
  0x87   : > { %1102 = vsyncadd (%p1515_p6), [#allocation9], 4294966656  ;;  %vm314_vm0 = vcmask 261120   ;;  %v303_v0 = vld [vmem:[#allocation5] sm:$0xff]  ;;  %v304_v1 = vld [vmem:[#allocation5 + $0x8] sm:$0xff]  ;;  %s724_s24 = sshll.u32 %s1372_s29, 4 }
  0x88   : > { %v305_v2 = vld [vmem:[#allocation5 + $0x10] sm:$0xff]  ;;  %v801_v3 = vpack.c.bf16 %v304_v1, %v303_v0  ;;  %v306_v4 = vld [vmem:[#allocation5 + $0x18] sm:$0xff]  ;;  %v299_v5 = vld [vmem:[%s1378_s6] sm:$0xff]  ;;  %vm438_vm1 = vcmask 326656   ;;  %vm428_vm2 = vcmask 322560   ;;  %s288_s26 = scalar_lea.vmem [#allocation10], %s724_s24 }
  0x89   : > { %v805_v6 = vpack.c.bf16 %v306_v4, %v305_v2  ;;  %779 = vmatprep.mubr.msk.f32.mxu0 %vm314_vm0, %v299_v5  ;;  %v433_v7 = vld [vmem:[#allocation8] sm:$0xff]  ;;  %v434_v8 = vld [vmem:[#allocation8 + $0x8] sm:$0xff]  ;;  %v435_v9 = vld [vmem:[#allocation8 + $0x10] sm:$0xff]  ;;  %s560_s23 = sshll.u32 %s288_s26, 4  ;;  %s752_s27 = sshll.u32 %s1190_s22, 8  ;;  %s1409_s23 = int_to_ptr.vmem [resolvable:$true] %s560_s23 }
  0x8a   : > { %802 = vmatprep.subr.bf16.mxu0 %v801_v3  ;;  %v436_v10 = vld [vmem:[#allocation8 + $0x18] sm:$0xff]  ;;  %v809_v11 = vpack.c.bf16 %v434_v8, %v433_v7  ;;  %v300_v13 = vld [vmem:[%s1378_s6 + $0x8] sm:$0xff]  ;;  %v301_v14 = vld [vmem:[%s1378_s6 + $0x10] sm:$0xff]  ;;  %s1415_s17 = scalar_lea.hbm %s1497_s4, %s752_s27  ;;  %s542_s13 = scalar_lea.sflag [#allocation4], %s1372_s29 }
  0x8b   : > { %804 = vmatpush3.bf16.msra.mxu0 %v801_v3  ;;  %v813_v12 = vpack.c.bf16 %v436_v10, %v435_v9  ;;  %v302_v15 = vld [vmem:[%s1378_s6 + $0x18] sm:$0xff]  ;;  %v437_v16 = vld [vmem:[#allocation8 + $0x20] sm:$0xff]  ;;  %v726_v17 = vld [vmem:[#allocation7] ss:$0 sm:$0xff]  ;;  %s1019_s10 = scalar_lea.vmem %s1409_s23, 256  ;;  %s1133_s16 = smov [#allocation10]  }
  0x8c   : > { %806 = vmatprep.subr.bf16.mxu0 %v805_v6  ;;  %810 = vmatprep.subr.bf16.mxu1 %v809_v11  ;;  %p1020_p10 = scmp.ne.s32.totalorder %s1409_s23, %s1019_s10  ;;  %s1023_s30 = sshll.u32 %s1133_s16, 4  ;;  %s1024_s30 = int_to_ptr.vmem [resolvable:$false] %s1023_s30 }
  0x8d   : > { %812 = vmatpush3.bf16.msra.mxu1 %v809_v11  ;;  %s1025_s11 = scalar_lea.vmem %s1024_s30, 512  ;;  %p1026_p12 = scmp.lt.s32.totalorder %s1409_s23, %s1024_s30 }
  0x8e   : > { %814 = vmatprep.subr.bf16.mxu1 %v813_v12  ;;  %p1021_p3 = pnand %p1020_p10, %p1321_p5  ;;  %p1027_p1 = scmp.lt.s32.totalorder %s1025_s11, %s1019_s10 }
  0x8f   : > { %808 = vmatpush3.bf16.msra.mxu0 %v805_v6 }
  0x90   : > { %p1022_p7 = pneg %p1021_p3  ;;  %p1028_p2 = por %p1027_p1, %p1026_p12 }
  0x91   : > { %816 = vmatpush3.bf16.msra.mxu1 %v813_v12 }
  0x92   : > { %780 = vmatmul.mubr.msk.f32.vlgmr.msra.gmra.mrb[0].mxu0 %vm314_vm0, %v300_v13  ;;  %793 = vmatprep.subr.mxu1 %v437_v16  ;;  %p1029_p4 = pnand %p1028_p2, %p1022_p7 }
  0x93   : > { %782 = vmatprep.mubr.msk.f32.mxu0 %vm314_vm0, %v301_v14 }
  0x95   : > { %794 = vmatpush3.msra.mxu1 %v437_v16 }
  0x96   : > { %783 = vmatmul.mubr.msk.f32.gmra.mrb[2].mxu0 %vm314_vm0, %v302_v15 }
 0x165   : > { %v781_v18 = vpop.f32.mrb[0].mxu0 }
 0x166   : > { %v399_v19 = vadd.f32 %v781_v18, %v726_v17  ;;  %v393_v20 = vpop.f32.mrb[1].mxu0 }
 0x167   : > { %v394_v21 = vadd.f32 %v726_v17, %v393_v20 }
 0x168   : > { %v749_v22 = vpack.c.bf16 %v399_v19, %v399_v19 }
 0x169   : > { %v748_v23 = vpack.c.bf16 %v394_v21, %v394_v21  ;;  %v784_v24 = vpop.f32.mrb[2].mxu0  ;;  %795 = vmatprep.mubr.msk.f32.mxu1 %vm438_vm1, %v394_v21 }
 0x16a   : > { %430 = vst.msk [vmem:[%s288_s26 + $0x4] sm:$0xf] %vm428_vm2, %v749_v22  ;;  %v409_v25 = vadd.f32 %v784_v24, %v726_v17  ;;  %v403_v26 = vpop.f32.mrb[3].mxu0  ;;  %796 = vmatmul.mubr.msk.f32.vlgmr.msra.gmra.mrb[0].mxu1 %vm438_vm1, %v399_v19 }
 0x16b   : > { %429 = vst.msk [vmem:[%s288_s26] sm:$0xf] %vm428_vm2, %v748_v23  ;;  %v404_v27 = vadd.f32 %v726_v17, %v403_v26 }
 0x16c   : > { %v751_v28 = vpack.c.bf16 %v409_v25, %v409_v25 }
 0x16d   : > { %v750_v29 = vpack.c.bf16 %v404_v27, %v404_v27  ;;  %798 = vmatprep.mubr.msk.f32.mxu1 %vm438_vm1, %v404_v27 }
 0x16e   : > { %432 = vst.msk [vmem:[%s288_s26 + $0xc] sm:$0xf] %vm428_vm2, %v751_v28  ;;  %799 = vmatmul.mubr.msk.f32.gmra.mrb[2].mxu1 %vm438_vm1, %v409_v25 }
 0x16f   : > { %431 = vst.msk [vmem:[%s288_s26 + $0x8] sm:$0xf] %vm428_vm2, %v750_v29 }
 0x170   : > { %1032 = shalt.err (!%p1029_p4)
}
 0x171   : > { %s1033_s12 = scalar_lea.hbm %s1415_s17, 256  ;;  %s1037_s26 = scalar_lea.hbm %s1497_s4, 512 }
 0x172   : > { %p1034_p9 = scmp.ne.s32.totalorder %s1415_s17, %s1033_s12  ;;  %p1038_p8 = scmp.lt.u32.totalorder %s1415_s17, %s1497_s4 }
 0x173   : > { %p1039_p13 = scmp.lt.u32.totalorder %s1037_s26, %s1033_s12  ;;  %p1041_p10 = scmp.lt.u32.totalorder %s1033_s12, %s1415_s17 }
 0x174   : > { %p1035_p0 = pnand %p1034_p9, %p1321_p5 }
 0x175   : > { %p1040_p6 = por %p1039_p13, %p1038_p8 }
 0x176   : > { %p1036_p11 = pneg %p1035_p0 }
 0x177   : > { %p1042_p3 = por %p1041_p10, %p1040_p6 }
 0x179   : > { %p1043_p7 = pnand %p1042_p3, %p1036_p11 }
 0x17b   : > { %1046 = shalt.err (!%p1043_p7)
}
 0x17c   : > { %s1134_s28 = smov 64   ;;  %s1135_s10 = smov 4   ;;  %vm536_vm3 = vcmask 130048  }
 0x17d   : > { %831 = dma.vmem_to_hbm [thread:$0]  (%p1321_p5), %s1409_s23, 256, %s1415_s17, %s542_s13, %s1134_s28, %s1134_s28, %s1135_s10  }
 0x17e   : > { %s295_s16 = scalar_lea.vmem [#allocation11], %s720_s8  ;;  %s753_s11 = sshll.u32 %s1190_s22, 9 }
 0x17f   : > { %s576_s30 = sshll.u32 %s295_s16, 4  ;;  %s1449_s24 = scalar_lea.hbm %s1498_s5, %s753_s11  ;;  %s1444_s30 = int_to_ptr.vmem [resolvable:$true] %s576_s30 }
 0x180   : > { %s547_s8 = scalar_lea.sflag [#allocation12], %s1372_s29  ;;  %s1047_s23 = scalar_lea.vmem %s1444_s30, 512 }
 0x181   : > { %p1048_p12 = scmp.ne.s32.totalorder %s1444_s30, %s1047_s23  ;;  %s1136_s22 = smov [#allocation11]  }
 0x182   : > { %s1051_s17 = sshll.u32 %s1136_s22, 4  ;;  %s1052_s17 = int_to_ptr.vmem [resolvable:$false] %s1051_s17 }
 0x183   : > { %p1049_p1 = pnand %p1048_p12, %p1321_p5  ;;  %s1053_s13 = scalar_lea.vmem %s1052_s17, 1024 }
 0x184   : > { %p1054_p4 = scmp.lt.s32.totalorder %s1444_s30, %s1052_s17  ;;  %p1055_p9 = scmp.lt.s32.totalorder %s1053_s13, %s1047_s23 }
 0x185   : > { %p1050_p2 = pneg %p1049_p1 }
 0x186   : > { %p1056_p0 = por %p1055_p9, %p1054_p4 }
 0x188   : > { %p1057_p11 = pnand %p1056_p0, %p1050_p2 }
 0x23d   : > { %v797_v30 = vpop.f32.mrb[0].mxu1 }
 0x23e   : > { %538 = vst.msk [vmem:[%s295_s16 + $0x8] sm:$0xff] %vm536_vm3, %v797_v30  ;;  %v517_v31 = vpop.f32.mrb[1].mxu1 }
 0x23f   : > { %537 = vst.msk [vmem:[%s295_s16] sm:$0xff] %vm536_vm3, %v517_v31 }
 0x241   : > { %v800_v32 = vpop.f32.mrb[2].mxu1 }
 0x242   : > { %540 = vst.msk [vmem:[%s295_s16 + $0x18] sm:$0xff] %vm536_vm3, %v800_v32  ;;  %v527_v33 = vpop.f32.mrb[3].mxu1 }
 0x243   : > { %539 = vst.msk [vmem:[%s295_s16 + $0x10] sm:$0xff] %vm536_vm3, %v527_v33 }
 0x244   : > { %1060 = shalt.err (!%p1057_p11)
}
 0x245   : > { %s1061_s26 = scalar_lea.hbm %s1449_s24, 512  ;;  %s1065_s28 = scalar_lea.hbm %s1498_s5, 1024 }
 0x246   : > { %p1062_p8 = scmp.ne.s32.totalorder %s1449_s24, %s1061_s26  ;;  %p1066_p10 = scmp.lt.u32.totalorder %s1449_s24, %s1498_s5 }
 0x247   : > { %p1067_p3 = scmp.lt.u32.totalorder %s1065_s28, %s1061_s26  ;;  %p1069_p12 = scmp.lt.u32.totalorder %s1061_s26, %s1449_s24 }
 0x248   : > { %p1063_p13 = pnand %p1062_p8, %p1321_p5 }
 0x249   : > { %p1068_p7 = por %p1067_p3, %p1066_p10 }
 0x24a   : > { %p1064_p6 = pneg %p1063_p13 }
 0x24b   : > { %p1070_p1 = por %p1069_p12, %p1068_p7 }
 0x24d   : > { %p1071_p2 = pnand %p1070_p1, %p1064_p6 }
 0x24f   : > { %1074 = shalt.err (!%p1071_p2)
}
 0x250   : > { %s1137_s11 = smov 128   ;;  %s1138_s12 = smov 8  }
 0x251   : > { %832 = dma.vmem_to_hbm [thread:$0]  (%p1321_p5), %s1444_s30, 512, %s1449_s24, %s547_s8, %s1137_s11, %s1137_s11, %s1138_s12  }
 0x252 PF: > { %s591_s6 = sand.u32 1, %s1113_s18   ;;  %p1516_p4 = scmp.ne.s32.totalorder %s1503_s25, 0 }
 0x253   : > { %p1517_p9 = scmp.ge.s32.totalorder %s1125_s21, 2  ;;  %s592_s23 = scalar_lea.sflag [#allocation4], %s591_s6 }
 0x255   : > { %p850_p0 = pnand %p1517_p9, %p1516_p4 }
 0x257   : > { %1104 = dma.done.wait (!%p850_p0), %s592_s23, 256  }
 0x258   : > { %1106 = vsyncadd (!%p850_p0), %s592_s23, 4294967040  ;;  %s601_s22 = scalar_lea.sflag [#allocation12], %s591_s6 }
 0x259   : > { %1108 = dma.done.wait (!%p850_p0), %s601_s22, 512  }
 0x25a   : > { %1110 = vsyncadd (!%p850_p0), %s601_s22, 4294966784  ;;  %p24_p5 = scmp.ge.s32.totalorder %s1307_s14, 4   ;;  %s1518_s18 = smov %s1117_s19 }
 0x25b   : > { %s1519_s19 = smov %s1121_s20  ;;  %s1520_s20 = smov %s1317_s7 }
 0x25c   : > { %s1521_s21 = smov %s1307_s14  ;;  %26 = sbr.rel (!%p24_p5) target bundleno = 9 (0x9), region = 110 }
 0x263   :  { %606 = vsyncpa [#allocation3], 1 }
 0x264   :  { %608 = vsyncpa [#allocation3 + $0x1], 1 }
 0x265   :  { %609 = vsyncpa [#allocation6], 1 }
 0x266   :  { %610 = vsyncpa [#allocation9], 1 }
 0x267   :  { %611 = vsyncpa [#allocation4], 1 }
 0x268   :  { %613 = vsyncpa [#allocation4 + $0x1], 1 }
 0x269   :  { %614 = vsyncpa [#allocation12], 1 }
 0x26a   :  { %616 = vsyncpa [#allocation12 + $0x1], 1 }

</bundles_post_ra>
